<compile_context>
chip_gen: v7x
topology: tpu7x:2x2x1
jax: 0.10.0
libtpu: 0.0.40
codegen_flags: <defaults>
</compile_context>

<pallas_src>
import jax
import jax.numpy as jnp
from jax.experimental import pallas as pl
from jax.experimental.pallas import tpu as pltpu

MIN_VALUE = -0.2
MAX_VALUE = 0.1


def linear_clamp_kernel(x_ref, w_ref, b_ref, o_ref):
    # x_ref: (M, K) f32, w_ref: (K, N) bf16, b_ref: (1, N) f32, o_ref: (M, N) f32
    x_bf16 = x_ref[...].astype(jnp.bfloat16)          # tiny (M*K) VPU cast
    acc = jnp.dot(x_bf16, w_ref[...],                  # bf16 x bf16 -> f32 MXU
                  preferred_element_type=jnp.float32)
    acc = acc + b_ref[...]                             # bias broadcast over M
    acc = jnp.minimum(jnp.maximum(acc, MIN_VALUE), MAX_VALUE)  # clamp_min/max
    o_ref[...] = acc.astype(o_ref.dtype)


def make_linear_clamp(w, b):
    """Build a callable x -> clamp(x @ w + b, MIN_VALUE, MAX_VALUE).

    The weight is cast to bf16 exactly once here, so every call streams half
    the weight bytes from HBM.  Accumulation remains f32 inside the kernel.
    """
    K, N = w.shape
    w_bf16 = jnp.asarray(w, jnp.bfloat16)
    b2d = jnp.asarray(b, jnp.float32).reshape(1, N)

    def call(x):
        M, K2 = x.shape
        assert K2 == K
        cost = pl.CostEstimate(
            flops=2 * M * K * N,
            transcendentals=0,
            bytes_accessed=M * K * 4 + K * N * 2 + N * 4 + M * N * 4,
        )
        # Gridless call: every operand is a single whole-array VMEM block;
        # no pipeline prologue/epilogue, no revolving buffers, lane-dense
        # (N=512) output for unmasked stores.
        return pl.pallas_call(
            linear_clamp_kernel,
            out_shape=jax.ShapeDtypeStruct((M, N), jnp.float32),
            in_specs=[
                pl.BlockSpec(memory_space=pltpu.MemorySpace.VMEM),
                pl.BlockSpec(memory_space=pltpu.MemorySpace.VMEM),
                pl.BlockSpec(memory_space=pltpu.MemorySpace.VMEM),
            ],
            out_specs=pl.BlockSpec(memory_space=pltpu.MemorySpace.VMEM),
            cost_estimate=cost,
        )(x, w_bf16, b2d)

    return call


if __name__ == "__main__":
    key = jax.random.PRNGKey(0)
    kx, kw, kb = jax.random.split(key, 3)

    in_features, out_features = 256, 512
    # Deterministic synthetic parameters (PyTorch Linear init style: U(-s, s)).
    bound = 1.0 / (in_features ** 0.5)
    w = jax.random.uniform(kw, (in_features, out_features),
                           minval=-bound, maxval=bound, dtype=jnp.float32)
    b = jax.random.uniform(kb, (out_features,),
                           minval=-bound, maxval=bound, dtype=jnp.float32)

    # Input matching the module's x1 = torch.randn(1, 256)
    x1 = jax.random.normal(kx, (1, in_features), dtype=jnp.float32)

    linear_clamp = make_linear_clamp(w, b)
    out = jax.jit(linear_clamp)(x1)
    out = jax.block_until_ready(out)
    assert out.shape == (1, out_features)

    # Tight check: same bf16-weight computation in plain JAX (validates kernel).
    ref_bf16 = jnp.minimum(
        jnp.maximum(
            jnp.dot(x1.astype(jnp.bfloat16), w.astype(jnp.bfloat16),
                    preferred_element_type=jnp.float32) + b,
            MIN_VALUE),
        MAX_VALUE)
    assert jnp.allclose(out, ref_bf16, atol=1e-5, rtol=1e-5)

    # Loose check against the full-f32 module semantics (bf16 weight rounding
    # bounded well below 1e-2 for this K=256 dot, and the clamp tightens it).
    ref_f32 = jnp.minimum(
        jnp.maximum(jnp.dot(x1, w, precision=jax.lax.Precision.HIGHEST) + b,
                    MIN_VALUE),
        MAX_VALUE)
    assert jnp.allclose(out, ref_f32, atol=1e-2, rtol=1e-2)

    print("KERNEL_OK")
</pallas_src>

<mosaic_0001>
module attributes {stable_mosaic.version = 11 : i64} {
  func.func @linear_clamp_kernel(%arg0: memref<1x256xf32, #tpu.memory_space<vmem>>, %arg1: memref<256x512xbf16, #tpu.memory_space<vmem>>, %arg2: memref<1x512xf32, #tpu.memory_space<vmem>>, %arg3: memref<1x512xf32, #tpu.memory_space<vmem>>) attributes {dimension_semantics = [], scalar_prefetch = 0 : i64, scratch_operands = 0 : i64, tpu.core_type = #tpu.core_type<tc>} {
    %c0 = arith.constant 0 : index
    %c0_0 = arith.constant 0 : index
    %0 = vector.load %arg0[%c0, %c0_0] : memref<1x256xf32, #tpu.memory_space<vmem>>, vector<1x256xf32>
    %1 = arith.truncf %0 : vector<1x256xf32> to vector<1x256xbf16>
    %c0_1 = arith.constant 0 : index
    %c0_2 = arith.constant 0 : index
    %2 = vector.load %arg1[%c0_1, %c0_2] : memref<256x512xbf16, #tpu.memory_space<vmem>>, vector<256x512xbf16>
    %cst = arith.constant dense<0.000000e+00> : vector<1x512xf32>
    %3 = tpu.matmul %1, %2, %cst {dimension_numbers = #tpu.dot_dimension_numbers<[1], [0], [0], [1], [0, 0, 1, 1], [], []>} : vector<1x256xbf16>, vector<256x512xbf16>, vector<1x512xf32> -> vector<1x512xf32>
    %c0_3 = arith.constant 0 : index
    %c0_4 = arith.constant 0 : index
    %4 = vector.load %arg2[%c0_3, %c0_4] : memref<1x512xf32, #tpu.memory_space<vmem>>, vector<1x512xf32>
    %5 = arith.addf %3, %4 : vector<1x512xf32>
    %cst_5 = arith.constant -2.000000e-01 : f32
    %6 = vector.broadcast %cst_5 : f32 to vector<1x512xf32>
    %7 = arith.maximumf %5, %6 : vector<1x512xf32>
    %cst_6 = arith.constant 1.000000e-01 : f32
    %8 = vector.broadcast %cst_6 : f32 to vector<1x512xf32>
    %9 = arith.minimumf %7, %8 : vector<1x512xf32>
    %c0_7 = arith.constant 0 : index
    %c0_8 = arith.constant 0 : index
    %10 = vector.load %arg3[%c0_7, %c0_8] : memref<1x512xf32, #tpu.memory_space<vmem>>, vector<1x512xf32>
    tpu.vector_store %arg3[%c0_7, %c0_8], %9 {strides = array<i32>} : memref<1x512xf32, #tpu.memory_space<vmem>>, vector<1x512xf32>,
    return
  }
}

</mosaic_0001>

<bundles_post_ra>
// kernel: call.1
= control target key start
LH: loop header
LB: loop body
LE: loop exit
PB: predicated region body
PF: predicated region fallthrough
CT: control target
= control target key end

     0   :  { %v17_v36 = vlaneseq  ;;  %s1004_s0 = inlined_call_operand.vmem [shape: f32[1,256], index: 0, kind: input, shape index: {}]   ;;  %s1005_s1 = inlined_call_operand.vmem [shape: bf16[256,512], index: 1, kind: input, shape index: {}]   ;;  %s1006_s2 = inlined_call_operand.vmem [shape: f32[1,512], index: 2, kind: input, shape index: {}]   ;;  %s1007_s3 = inlined_call_operand.hbm [shape: f32[1,512], index: 3, kind: output, shape index: {}]  }
   0x1   :  { %v639_v0 = vld [vmem:[%s1005_s1 + $0x4] ss:$16 sps:$4 sm:$0xff]   ;;  %v641_v1 = vld [vmem:[%s1005_s1 + $0xc] ss:$16 sps:$4 sm:$0xff]   ;;  %v643_v2 = vld [vmem:[%s1005_s1] ss:$16 sps:$4 sm:$0xff]  }
   0x2   :  { %435 = vmatprep.subr.bf16.mxu0 %v639_v0  ;;  %v644_v3 = vld [vmem:[%s1005_s1 + $0x8] ss:$16 sps:$4 sm:$0xff]   ;;  %476 = vmatprep.subr.bf16.mxu1 %v641_v1  ;;  %v645_v4 = vld [vmem:[%s1005_s1 + $0x24] ss:$16 sps:$4 sm:$0xff]   ;;  %v647_v5 = vld [vmem:[%s1005_s1 + $0x2c] ss:$16 sps:$4 sm:$0xff]  }
   0x3   :  { %436 = vmatpush1.bf16.msra.mxu0 %v643_v2  ;;  %477 = vmatpush1.bf16.msra.mxu1 %v644_v3  ;;  %v649_v6 = vld [vmem:[%s1005_s1 + $0x20] ss:$16 sps:$4 sm:$0xff]   ;;  %v650_v7 = vld [vmem:[%s1005_s1 + $0x28] ss:$16 sps:$4 sm:$0xff]   ;;  %v651_v8 = vld [vmem:[%s1005_s1 + $0x44] ss:$16 sps:$4 sm:$0xff]  }
   0x4   :  { %437 = vmatprep.subr.bf16.mxu0 %v645_v4  ;;  %478 = vmatprep.subr.bf16.mxu1 %v647_v5  ;;  %v653_v9 = vld [vmem:[%s1005_s1 + $0x4c] ss:$16 sps:$4 sm:$0xff]   ;;  %v655_v10 = vld [vmem:[%s1005_s1 + $0x40] ss:$16 sps:$4 sm:$0xff]   ;;  %v656_v11 = vld [vmem:[%s1005_s1 + $0x48] ss:$16 sps:$4 sm:$0xff]  }
   0x5   :  { %v657_v12 = vld [vmem:[%s1005_s1 + $0x64] ss:$16 sps:$4 sm:$0xff]   ;;  %v659_v13 = vld [vmem:[%s1005_s1 + $0x6c] ss:$16 sps:$4 sm:$0xff]   ;;  %v661_v14 = vld [vmem:[%s1005_s1 + $0x60] ss:$16 sps:$4 sm:$0xff]  }
   0x6   :  { %v662_v15 = vld [vmem:[%s1005_s1 + $0x68] ss:$16 sps:$4 sm:$0xff]   ;;  %v663_v16 = vld [vmem:[%s1005_s1 + $0x84] ss:$16 sps:$4 sm:$0xff]   ;;  %v665_v17 = vld [vmem:[%s1005_s1 + $0x8c] ss:$16 sps:$4 sm:$0xff]  }
   0x7   :  { %438 = vmatpush1.bf16.msra.mxu0 %v649_v6  ;;  %479 = vmatpush1.bf16.msra.mxu1 %v650_v7  ;;  %v667_v18 = vld [vmem:[%s1005_s1 + $0x80] ss:$16 sps:$4 sm:$0xff]   ;;  %v668_v19 = vld [vmem:[%s1005_s1 + $0x88] ss:$16 sps:$4 sm:$0xff]   ;;  %v669_v20 = vld [vmem:[%s1005_s1 + $0xa4] ss:$16 sps:$4 sm:$0xff]  }
   0x8   :  { %439 = vmatprep.subr.bf16.mxu0 %v651_v8  ;;  %480 = vmatprep.subr.bf16.mxu1 %v653_v9  ;;  %v671_v21 = vld [vmem:[%s1005_s1 + $0xac] ss:$16 sps:$4 sm:$0xff]   ;;  %v673_v22 = vld [vmem:[%s1005_s1 + $0xa0] ss:$16 sps:$4 sm:$0xff]   ;;  %v674_v23 = vld [vmem:[%s1005_s1 + $0xa8] ss:$16 sps:$4 sm:$0xff]  }
   0x9   :  { %v675_v24 = vld [vmem:[%s1005_s1 + $0xc4] ss:$16 sps:$4 sm:$0xff]   ;;  %v677_v25 = vld [vmem:[%s1005_s1 + $0xcc] ss:$16 sps:$4 sm:$0xff]   ;;  %v679_v26 = vld [vmem:[%s1005_s1 + $0xc0] ss:$16 sps:$4 sm:$0xff]  }
   0xa   :  { %v680_v27 = vld [vmem:[%s1005_s1 + $0xc8] ss:$16 sps:$4 sm:$0xff]   ;;  %v681_v28 = vld [vmem:[%s1005_s1 + $0xe4] ss:$16 sps:$4 sm:$0xff]   ;;  %v683_v29 = vld [vmem:[%s1005_s1 + $0xec] ss:$16 sps:$4 sm:$0xff]  }
   0xb   :  { %440 = vmatpush1.bf16.msra.mxu0 %v655_v10  ;;  %481 = vmatpush1.bf16.msra.mxu1 %v656_v11  ;;  %v685_v30 = vld [vmem:[%s1005_s1 + $0xe0] ss:$16 sps:$4 sm:$0xff]   ;;  %v686_v31 = vld [vmem:[%s1005_s1 + $0xe8] ss:$16 sps:$4 sm:$0xff]   ;;  %v687_v32 = vld [vmem:[%s1005_s1 + $0x104] ss:$16 sps:$4 sm:$0xff]  }
   0xc   :  { %441 = vmatprep.subr.bf16.mxu0 %v657_v12  ;;  %482 = vmatprep.subr.bf16.mxu1 %v659_v13  ;;  %v689_v33 = vld [vmem:[%s1005_s1 + $0x10c] ss:$16 sps:$4 sm:$0xff]   ;;  %v691_v34 = vld [vmem:[%s1005_s1 + $0x100] ss:$16 sps:$4 sm:$0xff]   ;;  %v692_v35 = vld [vmem:[%s1005_s1 + $0x108] ss:$16 sps:$4 sm:$0xff]  }
   0xd   :  { %v693_v37 = vld [vmem:[%s1005_s1 + $0x124] ss:$16 sps:$4 sm:$0xff]   ;;  %v695_v38 = vld [vmem:[%s1005_s1 + $0x12c] ss:$16 sps:$4 sm:$0xff]   ;;  %v697_v39 = vld [vmem:[%s1005_s1 + $0x120] ss:$16 sps:$4 sm:$0xff]  }
   0xe   :  { %v899_v40 = vshrl.u32 %v17_v36, 7  ;;  %v698_v41 = vld [vmem:[%s1005_s1 + $0x128] ss:$16 sps:$4 sm:$0xff]   ;;  %v699_v42 = vld [vmem:[%s1005_s1 + $0x144] ss:$16 sps:$4 sm:$0xff]  }
   0xf   :  { %442 = vmatpush1.bf16.msra.mxu0 %v661_v14  ;;  %483 = vmatpush1.bf16.msra.mxu1 %v662_v15  ;;  %v701_v43 = vld [vmem:[%s1005_s1 + $0x14c] ss:$16 sps:$4 sm:$0xff]   ;;  %v703_v44 = vld [vmem:[%s1005_s1 + $0x140] ss:$16 sps:$4 sm:$0xff]   ;;  %v704_v45 = vld [vmem:[%s1005_s1 + $0x148] ss:$16 sps:$4 sm:$0xff]  }
  0x10   :  { %443 = vmatprep.subr.bf16.mxu0 %v663_v16  ;;  %484 = vmatprep.subr.bf16.mxu1 %v665_v17  ;;  %v23_v46 = vsub.s32 1, %v899_v40  ;;  %v705_v47 = vld [vmem:[%s1005_s1 + $0x164] ss:$16 sps:$4 sm:$0xff]   ;;  %v707_v48 = vld [vmem:[%s1005_s1 + $0x16c] ss:$16 sps:$4 sm:$0xff]  }
  0x11   :  { %v15_v49 = vld [vmem:[%s1004_s0] sm:$0x3] }
  0x12   :  { %v24_v50 = vrot.slane %v15_v49, %v23_v46 }
  0x13   :  { %444 = vmatpush1.bf16.msra.mxu0 %v667_v18  ;;  %485 = vmatpush1.bf16.msra.mxu1 %v668_v19 }
  0x14   :  { %445 = vmatprep.subr.bf16.mxu0 %v669_v20  ;;  %486 = vmatprep.subr.bf16.mxu1 %v671_v21 }
  0x17   :  { %446 = vmatpush1.bf16.msra.mxu0 %v673_v22  ;;  %487 = vmatpush1.bf16.msra.mxu1 %v674_v23 }
  0x18   :  { %447 = vmatprep.subr.bf16.mxu0 %v675_v24  ;;  %488 = vmatprep.subr.bf16.mxu1 %v677_v25 }
  0x1b   :  { %448 = vmatpush1.bf16.msra.mxu0 %v679_v26  ;;  %489 = vmatpush1.bf16.msra.mxu1 %v680_v27 }
  0x1c   :  { %449 = vmatprep.subr.bf16.mxu0 %v681_v28  ;;  %490 = vmatprep.subr.bf16.mxu1 %v683_v29 }
  0x1f   :  { %450 = vmatpush1.bf16.msra.mxu0 %v685_v30  ;;  %491 = vmatpush1.bf16.msra.mxu1 %v686_v31 }
  0x20   :  { %451 = vmatprep.subr.bf16.mxu0 %v687_v32  ;;  %492 = vmatprep.subr.bf16.mxu1 %v689_v33 }
  0x23   :  { %452 = vmatpush1.bf16.msra.mxu0 %v691_v34  ;;  %493 = vmatpush1.bf16.msra.mxu1 %v692_v35 }
  0x24   :  { %453 = vmatprep.subr.bf16.mxu0 %v693_v37  ;;  %494 = vmatprep.subr.bf16.mxu1 %v695_v38 }
  0x27   :  { %454 = vmatpush1.bf16.msra.mxu0 %v697_v39  ;;  %495 = vmatpush1.bf16.msra.mxu1 %v698_v41 }
  0x28   :  { %455 = vmatprep.subr.bf16.mxu0 %v699_v42  ;;  %496 = vmatprep.subr.bf16.mxu1 %v701_v43 }
  0x29   :  { %8 = vsyncpa [#allocation3], 0  ;;  %v709_v51 = vld [vmem:[%s1005_s1 + $0x160] ss:$16 sps:$4 sm:$0xff]   ;;  %v710_v52 = vld [vmem:[%s1005_s1 + $0x168] ss:$16 sps:$4 sm:$0xff]   ;;  %v28_v55 = vpack.c.bf16 %v24_v50, %v24_v50 }
  0x2a   :  { %v711_v53 = vld [vmem:[%s1005_s1 + $0x184] ss:$16 sps:$4 sm:$0xff]   ;;  %v713_v54 = vld [vmem:[%s1005_s1 + $0x18c] ss:$16 sps:$4 sm:$0xff]   ;;  %v715_v56 = vld [vmem:[%s1005_s1 + $0x180] ss:$16 sps:$4 sm:$0xff]  }
  0x2b   :  { %456 = vmatpush1.bf16.msra.mxu0 %v703_v44  ;;  %497 = vmatpush1.bf16.msra.mxu1 %v704_v45  ;;  %v716_v57 = vld [vmem:[%s1005_s1 + $0x188] ss:$16 sps:$4 sm:$0xff]   ;;  %v717_v58 = vld [vmem:[%s1005_s1 + $0x1a4] ss:$16 sps:$4 sm:$0xff]   ;;  %v719_v59 = vld [vmem:[%s1005_s1 + $0x1ac] ss:$16 sps:$4 sm:$0xff]  }
  0x2c   :  { %457 = vmatprep.subr.bf16.mxu0 %v705_v47  ;;  %498 = vmatprep.subr.bf16.mxu1 %v707_v48  ;;  %v721_v60 = vld [vmem:[%s1005_s1 + $0x1a0] ss:$16 sps:$4 sm:$0xff]   ;;  %v722_v61 = vld [vmem:[%s1005_s1 + $0x1a8] ss:$16 sps:$4 sm:$0xff]   ;;  %v723_v62 = vld [vmem:[%s1005_s1 + $0x1c4] ss:$16 sps:$4 sm:$0xff]  }
  0x2d   :  { %467 = vmatprep.mubr.bf16.mxu0 %v28_v55  ;;  %508 = vmatprep.mubr.bf16.mxu1 %v28_v55  ;;  %v725_v63 = vld [vmem:[%s1005_s1 + $0x1cc] ss:$16 sps:$4 sm:$0xff]   ;;  %v19_v0 = vsub.s32 0, %v899_v40  ;;  %v727_v1 = vld [vmem:[%s1005_s1 + $0x1c0] ss:$16 sps:$4 sm:$0xff]   ;;  %v425_v9 = vsub.s32 2, %v899_v40 }
  0x2e   :  { %v728_v2 = vld [vmem:[%s1005_s1 + $0x1c8] ss:$16 sps:$4 sm:$0xff]   ;;  %v729_v3 = vld [vmem:[%s1005_s1 + $0x1e4] ss:$16 sps:$4 sm:$0xff]   ;;  %v731_v4 = vld [vmem:[%s1005_s1 + $0x1ec] ss:$16 sps:$4 sm:$0xff]  }
  0x2f   :  { %458 = vmatpush1.bf16.msra.mxu0 %v709_v51  ;;  %499 = vmatpush1.bf16.msra.mxu1 %v710_v52  ;;  %v20_v5 = vrot.slane %v15_v49, %v19_v0  ;;  %v733_v6 = vld [vmem:[%s1005_s1 + $0x1e0] ss:$16 sps:$4 sm:$0xff]   ;;  %v734_v7 = vld [vmem:[%s1005_s1 + $0x1e8] ss:$16 sps:$4 sm:$0xff]   ;;  %v429_v11 = vsub.s32 3, %v899_v40  ;;  %s760_s1 = smov [#allocation2]  }
  0x30   :  { %459 = vmatprep.subr.bf16.mxu0 %v711_v53  ;;  %500 = vmatprep.subr.bf16.mxu1 %v713_v54  ;;  %v93_v10 = vld [vmem:[%s1006_s2] sm:$0xf]  ;;  %v759_v15 = vmov 1966171168   ;;  %s565_s2 = sshll.u32 %s760_s1, 4  ;;  %vm556_vm0 = vcmp.lt.s32.totalorder %v17_v36, 512  ;;  %s566_s2 = int_to_ptr.vmem [resolvable:$true] %s565_s2 }
  0x31   :  { %v27_v8 = vpack.c.bf16 %v20_v5, %v20_v5  ;;  %v418_v12 = vrot.slane %v93_v10, %v19_v0  ;;  %v426_v13 = vrot.slane %v93_v10, %v425_v9  ;;  %v422_v14 = vrot.slane %v93_v10, %v23_v46  ;;  %s735_s7 = scalar_lea.vmem %s566_s2, 64  ;;  %p740_p1 = scmp.lt.s32.totalorder %s566_s2, %s566_s2 }
  0x32   :  { %v532_v16 = vunpack.c.l.s4 %v759_v15  ;;  %v430_v17 = vrot.slane %v93_v10, %v429_v11  ;;  %p736_p0 = scmp.ne.s32.totalorder %s566_s2, %s735_s7  ;;  %p741_p2 = scmp.lt.s32.totalorder %s735_s7, %s735_s7 }
  0x33   :  { %460 = vmatpush1.bf16.msra.mxu0 %v715_v56  ;;  %501 = vmatpush1.bf16.msra.mxu1 %v716_v57 }
  0x34   :  { %461 = vmatprep.subr.bf16.mxu0 %v717_v58  ;;  %502 = vmatprep.subr.bf16.mxu1 %v719_v59  ;;  %v533_v25 = vunpack.c.0.s8 %v532_v16  ;;  %p742_p3 = por %p741_p2, %p740_p1 }
  0x36   :  { %v536_v39 = vsub.s32 %v533_v25, %v899_v40  ;;  %p743_p4 = pnand %p742_p3, %p736_p0 }
  0x37   :  { %462 = vmatpush1.bf16.msra.mxu0 %v721_v60  ;;  %503 = vmatpush1.bf16.msra.mxu1 %v722_v61 }
  0x38   :  { %463 = vmatprep.subr.bf16.mxu0 %v723_v62  ;;  %504 = vmatprep.subr.bf16.mxu1 %v725_v63 }
  0x3b   :  { %464 = vmatpush1.bf16.msra.mxu0 %v727_v1  ;;  %505 = vmatpush1.bf16.msra.mxu1 %v728_v2 }
  0x3c   :  { %465 = vmatprep.subr.bf16.mxu0 %v729_v3  ;;  %506 = vmatprep.subr.bf16.mxu1 %v731_v4 }
  0x3f   :  { %466 = vmatpush1.bf16.msra.mxu0 %v733_v6  ;;  %507 = vmatpush1.bf16.msra.mxu1 %v734_v7 }
  0x42   :  { %468 = vmatmul.mubr.bf16.vlgmr.msra.gmra.mrb[0].mxu0 %v27_v8  ;;  %509 = vmatmul.mubr.bf16.vlgmr.msra.gmra.mrb[0].mxu1 %v27_v8 }
 0x115   :  { %v469_v18 = vpop.f32.mrb[0].mxu0  ;;  %v510_v19 = vpop.f32.mrb[0].mxu1 }
 0x116   :  { %v470_v20 = vadd.f32 %v469_v18, %v418_v12  ;;  %v511_v21 = vadd.f32 %v510_v19, %v426_v13  ;;  %v471_v22 = vpop.f32.mrb[1].mxu0  ;;  %v512_v23 = vpop.f32.mrb[1].mxu1 }
 0x117   :  { %v472_v24 = vadd.f32 %v471_v22, %v422_v14  ;;  %v513_v26 = vadd.f32 %v512_v23, %v430_v17  ;;  %v473_v27 = vpop.f32.mrb[2].mxu0  ;;  %v514_v28 = vpop.f32.mrb[2].mxu1 }
 0x118   :  { %v517_v29 = vmax.f32 %v470_v20, -0.2  ;;  %v519_v30 = vmax.f32 %v511_v21, -0.2  ;;  %v474_v31 = vpop.f32.mrb[3].mxu0  ;;  %v515_v32 = vpop.f32.mrb[3].mxu1 }
 0x119   :  { %v518_v33 = vmax.f32 %v472_v24, -0.2  ;;  %v520_v34 = vmax.f32 %v513_v26, -0.2 }
 0x11a   :  { %v521_v35 = vmin.f32 %v517_v29, 0.1  ;;  %v523_v37 = vmin.f32 %v519_v30, 0.1 }
 0x11b   :  { %v522_v38 = vmin.f32 %v518_v33, 0.1  ;;  %v524_v41 = vmin.f32 %v520_v34, 0.1 }
 0x11d   :  { %v529_v42 = vcombine.low %v521_v35, %v522_v38  ;;  %v530_v43 = vcombine.low %v523_v37, %v524_v41 }
 0x11f   :  { %v537_v44 = vrot.slane %v529_v42, %v536_v39  ;;  %v544_v45 = vrot.slane %v530_v43, %v536_v39 }
 0x121   :  { %v545_v46 = vcombine.low %v537_v44, %v544_v45 }
 0x123   :  { %v552_v47 = vrot.slane %v545_v46, %v536_v39 }
 0x125   :  { %558 = vst.msk [vmem:[#allocation2] sm:$0xf] %vm556_vm0, %v552_v47 }
 0x126   :  { %746 = shalt.err (!%p743_p4)
}
 0x127   :  { %s747_s10 = scalar_lea.hbm %s1007_s3, 64 }
 0x128   :  { %p748_p5 = scmp.ne.s32.totalorder %s1007_s3, %s747_s10  ;;  %p751_p6 = scmp.lt.u32.totalorder %s747_s10, %s1007_s3 }
 0x12a   :  { %p753_p7 = pnand %p751_p6, %p748_p5 }
 0x12c   :  { %756 = shalt.err (!%p753_p7)
}
 0x12d   :  { %568 = dma.vmem_to_hbm [thread:$0]  %s566_s2, 64, %s1007_s3, [#allocation3]  }
 0x12e   :  { %757 = dma.done.wait [#allocation3], 64  }
 0x12f   :  { %758 = vsyncadd [#allocation3], 4294967232 }
 0x130   :  { %572 = vsyncpa [#allocation3], 1 }

</bundles_post_ra>
